<compile_context>
chip_gen: v6e
topology: v6e:2x2x1
jax: 0.10.0
libtpu: 0.0.40
codegen_flags: <defaults>
</compile_context>

<pallas_src>
import functools

import jax
import jax.numpy as jnp
from jax.experimental import pallas as pl
from jax.experimental.pallas import tpu as pltpu


def _actor_kernel(obs_ref, w1_ref, b1_ref, w2_ref, b2_ref, wh_ref, bh_ref,
                  head_ref):
    # obs arrives as f32; cast to bf16 in-kernel (VPU cast, no extra HBM pass).
    obs_bf = obs_ref[...].astype(jnp.bfloat16)

    # Layer 1: (TB, obs_dim)bf16 @ (obs_dim, H)bf16 -> f32 acc, +bias, ReLU
    h1 = jnp.dot(obs_bf, w1_ref[...], preferred_element_type=jnp.float32)
    h1 = jnp.maximum(h1 + b1_ref[...], 0.0)

    # Layer 2: (TB, H) @ (H, H) -> f32 acc, +bias, ReLU
    h2 = jnp.dot(h1.astype(jnp.bfloat16), w2_ref[...],
                 preferred_element_type=jnp.float32)
    h2 = jnp.maximum(h2 + b2_ref[...], 0.0)

    # Fused heads: (TB, H) @ (H, fused_pad) -> lane-dense f32 output slab.
    head = jnp.dot(h2.astype(jnp.bfloat16), wh_ref[...],
                   preferred_element_type=jnp.float32)
    head_ref[...] = (head + bh_ref[...]).astype(head_ref.dtype)


def prepare_actor_params(params):
    """One-time weight prep (hoisted out of the hot forward path).

    - Concatenates the mu / log_std head weights into one (H, 2*out) matrix
      and zero-pads the lane dim to a multiple of 128 (lane-dense stores).
    - Casts matmul weights to bfloat16 (bf16-native MXU, half the weight DMA);
      biases stay f32 (added to the f32 accumulator).
    Returns (prepped_params_dict, out_dim).
    """
    out_dim = params["wmu"].shape[1]
    fused = 2 * out_dim
    fused_pad = ((fused + 127) // 128) * 128

    wh = jnp.concatenate([params["wmu"], params["wls"]], axis=1)
    bh = jnp.concatenate([params["bmu"], params["bls"]], axis=1)
    if fused_pad != fused:
        wh = jnp.pad(wh, ((0, 0), (0, fused_pad - fused)))
        bh = jnp.pad(bh, ((0, 0), (0, fused_pad - fused)))

    prepped = {
        "w1": params["w1"].astype(jnp.bfloat16),
        "b1": params["b1"],
        "w2": params["w2"].astype(jnp.bfloat16),
        "b2": params["b2"],
        "wh": wh.astype(jnp.bfloat16),
        "bh": bh,
    }
    return prepped, out_dim


@functools.partial(jax.jit, static_argnames=("out_dim", "block_b"))
def actor_forward(obs, prepped, *, out_dim, block_b=512):
    """Actor forward pass as a single Pallas kernel.

    obs: (B, obs_dim) float32
    prepped: output of prepare_actor_params
    returns: (mu, log_std) each (B, out_dim) float32, log_std in [-20, 2].
    """
    B, obs_dim = obs.shape
    H = prepped["w1"].shape[1]
    fused_pad = prepped["wh"].shape[1]

    # Batch tile: multiple of 16 (covers bf16 sublane packing; >=256 fills the
    # 256-wide MXU on v6e/v7x for large batches), capped at block_b.
    tb = min(block_b, ((B + 15) // 16) * 16)
    b_pad = pl.cdiv(B, tb) * tb
    obs_p = obs if b_pad == B else jnp.pad(obs, ((0, b_pad - B), (0, 0)))

    grid = (b_pad // tb,)
    resident = lambda shape: pl.BlockSpec(shape, lambda i: (0, 0))

    head = pl.pallas_call(
        _actor_kernel,
        out_shape=jax.ShapeDtypeStruct((b_pad, fused_pad), jnp.float32),
        grid=grid,
        in_specs=[
            pl.BlockSpec((tb, obs_dim), lambda i: (i, 0)),   # obs tile, pipelined
            resident((obs_dim, H)),                          # w1 (VMEM-resident)
            resident((1, H)),                                # b1
            resident((H, H)),                                # w2
            resident((1, H)),                                # b2
            resident((H, fused_pad)),                        # fused head weights
            resident((1, fused_pad)),                        # fused head bias
        ],
        out_specs=pl.BlockSpec((tb, fused_pad), lambda i: (i, 0)),
        compiler_params=pltpu.CompilerParams(
            dimension_semantics=("parallel",)),
    )(obs_p, prepped["w1"], prepped["b1"], prepped["w2"], prepped["b2"],
      prepped["wh"], prepped["bh"])

    head = head[:B]
    mu = head[:, :out_dim]
    log_std = jnp.clip(head[:, out_dim:2 * out_dim], -20.0, 2.0)
    return mu, log_std


def init_actor_params(key, obs_dim, hidden_size, act_dim, max_replicas):
    """Deterministic init mimicking PyTorch nn.Linear default U(-1/sqrt(fan_in), +)."""
    out_dim = act_dim * (max_replicas + 1)

    def linear(key, fan_in, fan_out):
        kw, kb = jax.random.split(key)
        bound = 1.0 / jnp.sqrt(float(fan_in))
        w = jax.random.uniform(kw, (fan_in, fan_out), jnp.float32, -bound, bound)
        b = jax.random.uniform(kb, (1, fan_out), jnp.float32, -bound, bound)
        return w, b

    k1, k2, k3, k4 = jax.random.split(key, 4)
    w1, b1 = linear(k1, obs_dim, hidden_size)
    w2, b2 = linear(k2, hidden_size, hidden_size)
    wmu, bmu = linear(k3, hidden_size, out_dim)
    wls, bls = linear(k4, hidden_size, out_dim)
    return {"w1": w1, "b1": b1, "w2": w2, "b2": b2,
            "wmu": wmu, "bmu": bmu, "wls": wls, "bls": bls}


def reference_forward(obs, p):
    """Pure-JAX f32 reference (PyTorch module semantics)."""
    h1 = jnp.maximum(obs @ p["w1"] + p["b1"], 0.0)
    h2 = jnp.maximum(h1 @ p["w2"] + p["b2"], 0.0)
    mu = h2 @ p["wmu"] + p["bmu"]
    log_std = jnp.clip(h2 @ p["wls"] + p["bls"], -20.0, 2.0)
    return mu, log_std


if __name__ == "__main__":
    obs_dim = 32
    hidden_size = 256
    act_dim = 4
    max_replicas = 10   # -> output dim = 4 * 11 = 44
    batch = 2

    key = jax.random.PRNGKey(0)
    k_obs, k_params = jax.random.split(key)

    obs = jax.random.normal(k_obs, (batch, obs_dim), jnp.float32)
    params = init_actor_params(k_params, obs_dim, hidden_size, act_dim, max_replicas)

    # One-time weight prep (outside the hot path).
    prepped, out_dim = prepare_actor_params(params)
    prepped = jax.tree_util.tree_map(jax.block_until_ready, prepped)

    mu, log_std = actor_forward(obs, prepped, out_dim=out_dim)
    jax.block_until_ready((mu, log_std))

    mu_ref, ls_ref = reference_forward(obs, params)
    assert mu.shape == (batch, out_dim)
    assert log_std.shape == (batch, out_dim)
    # bf16 MXU operands with f32 accumulation: loosened tolerance vs. the
    # pure-f32 reference.
    assert jnp.allclose(mu, mu_ref, atol=5e-2, rtol=5e-2)
    assert jnp.allclose(log_std, ls_ref, atol=5e-2, rtol=5e-2)
    assert float(log_std.max()) <= 2.0 and float(log_std.min()) >= -20.0

    # Larger batch, single big tile (default block_b=512).
    big_obs = jax.random.normal(k_obs, (300, obs_dim), jnp.float32)
    big_mu, big_ls = actor_forward(big_obs, prepped, out_dim=out_dim)
    jax.block_until_ready((big_mu, big_ls))
    big_mu_ref, big_ls_ref = reference_forward(big_obs, params)
    assert big_mu.shape == (300, out_dim)
    assert jnp.allclose(big_mu, big_mu_ref, atol=5e-2, rtol=5e-2)
    assert jnp.allclose(big_ls, big_ls_ref, atol=5e-2, rtol=5e-2)

    # Same batch with a smaller tile to exercise a multi-step pipelined grid.
    t_mu, t_ls = actor_forward(big_obs, prepped, out_dim=out_dim, block_b=128)
    jax.block_until_ready((t_mu, t_ls))
    assert jnp.allclose(t_mu, big_mu_ref, atol=5e-2, rtol=5e-2)
    assert jnp.allclose(t_ls, big_ls_ref, atol=5e-2, rtol=5e-2)

    # TODO(synk): Actor.sample() (rsample + tanh squash + log_prob + argmax
    # discretization) is stochastic host/JAX-side logic and is not kernelized.
    print("KERNEL_OK")
</pallas_src>

<mosaic_0001>
module attributes {stable_mosaic.version = 11 : i64} {
  func.func @_actor_kernel(%arg0: i32, %arg1: memref<16x32xf32, #tpu.memory_space<vmem>>, %arg2: memref<32x256xbf16, #tpu.memory_space<vmem>>, %arg3: memref<1x256xf32, #tpu.memory_space<vmem>>, %arg4: memref<256x256xbf16, #tpu.memory_space<vmem>>, %arg5: memref<1x256xf32, #tpu.memory_space<vmem>>, %arg6: memref<256x128xbf16, #tpu.memory_space<vmem>>, %arg7: memref<1x128xf32, #tpu.memory_space<vmem>>, %arg8: memref<16x128xf32, #tpu.memory_space<vmem>>) attributes {dimension_semantics = [#tpu.dimension_semantics<parallel>], iteration_bounds = array<i64: 1>, scalar_prefetch = 0 : i64, scratch_operands = 0 : i64, tpu.core_type = #tpu.core_type<tc>, window_params = [{transform_indices = @transform_0, window_bounds = array<i64: 16, 32>}, {pipeline_mode = #tpu.pipeline_mode<synchronous>, transform_indices = @transform_1, window_bounds = array<i64: 32, 256>}, {pipeline_mode = #tpu.pipeline_mode<synchronous>, transform_indices = @transform_2, window_bounds = array<i64: 1, 256>}, {pipeline_mode = #tpu.pipeline_mode<synchronous>, transform_indices = @transform_3, window_bounds = array<i64: 256, 256>}, {pipeline_mode = #tpu.pipeline_mode<synchronous>, transform_indices = @transform_4, window_bounds = array<i64: 1, 256>}, {pipeline_mode = #tpu.pipeline_mode<synchronous>, transform_indices = @transform_5, window_bounds = array<i64: 256, 128>}, {pipeline_mode = #tpu.pipeline_mode<synchronous>, transform_indices = @transform_6, window_bounds = array<i64: 1, 128>}, {transform_indices = @transform_7, window_bounds = array<i64: 16, 128>}]} {
    %c0 = arith.constant 0 : index
    %c0_0 = arith.constant 0 : index
    %0 = vector.load %arg1[%c0, %c0_0] : memref<16x32xf32, #tpu.memory_space<vmem>>, vector<16x32xf32>
    %1 = arith.truncf %0 : vector<16x32xf32> to vector<16x32xbf16>
    %c0_1 = arith.constant 0 : index
    %c0_2 = arith.constant 0 : index
    %2 = vector.load %arg2[%c0_1, %c0_2] : memref<32x256xbf16, #tpu.memory_space<vmem>>, vector<32x256xbf16>
    %cst = arith.constant dense<0.000000e+00> : vector<16x256xf32>
    %3 = tpu.matmul %1, %2, %cst {dimension_numbers = #tpu.dot_dimension_numbers<[1], [0], [0], [1], [0, 0, 1, 1], [], []>} : vector<16x32xbf16>, vector<32x256xbf16>, vector<16x256xf32> -> vector<16x256xf32>
    %c0_3 = arith.constant 0 : index
    %c0_4 = arith.constant 0 : index
    %4 = vector.load %arg3[%c0_3, %c0_4] : memref<1x256xf32, #tpu.memory_space<vmem>>, vector<1x256xf32>
    %5 = vector.broadcast %4 : vector<1x256xf32> to vector<16x256xf32>
    %6 = arith.addf %3, %5 : vector<16x256xf32>
    %cst_5 = arith.constant 0.000000e+00 : f32
    %7 = vector.broadcast %cst_5 : f32 to vector<16x256xf32>
    %8 = arith.maximumf %6, %7 : vector<16x256xf32>
    %9 = arith.truncf %8 : vector<16x256xf32> to vector<16x256xbf16>
    %c0_6 = arith.constant 0 : index
    %c0_7 = arith.constant 0 : index
    %10 = vector.load %arg4[%c0_6, %c0_7] : memref<256x256xbf16, #tpu.memory_space<vmem>>, vector<256x256xbf16>
    %cst_8 = arith.constant dense<0.000000e+00> : vector<16x256xf32>
    %11 = tpu.matmul %9, %10, %cst_8 {dimension_numbers = #tpu.dot_dimension_numbers<[1], [0], [0], [1], [0, 0, 1, 1], [], []>} : vector<16x256xbf16>, vector<256x256xbf16>, vector<16x256xf32> -> vector<16x256xf32>
    %c0_9 = arith.constant 0 : index
    %c0_10 = arith.constant 0 : index
    %12 = vector.load %arg5[%c0_9, %c0_10] : memref<1x256xf32, #tpu.memory_space<vmem>>, vector<1x256xf32>
    %13 = vector.broadcast %12 : vector<1x256xf32> to vector<16x256xf32>
    %14 = arith.addf %11, %13 : vector<16x256xf32>
    %cst_11 = arith.constant 0.000000e+00 : f32
    %15 = vector.broadcast %cst_11 : f32 to vector<16x256xf32>
    %16 = arith.maximumf %14, %15 : vector<16x256xf32>
    %17 = arith.truncf %16 : vector<16x256xf32> to vector<16x256xbf16>
    %c0_12 = arith.constant 0 : index
    %c0_13 = arith.constant 0 : index
    %18 = vector.load %arg6[%c0_12, %c0_13] : memref<256x128xbf16, #tpu.memory_space<vmem>>, vector<256x128xbf16>
    %cst_14 = arith.constant dense<0.000000e+00> : vector<16x128xf32>
    %19 = tpu.matmul %17, %18, %cst_14 {dimension_numbers = #tpu.dot_dimension_numbers<[1], [0], [0], [1], [0, 0, 1, 1], [], []>} : vector<16x256xbf16>, vector<256x128xbf16>, vector<16x128xf32> -> vector<16x128xf32>
    %c0_15 = arith.constant 0 : index
    %c0_16 = arith.constant 0 : index
    %20 = vector.load %arg7[%c0_15, %c0_16] : memref<1x128xf32, #tpu.memory_space<vmem>>, vector<1x128xf32>
    %21 = vector.broadcast %20 : vector<1x128xf32> to vector<16x128xf32>
    %22 = arith.addf %19, %21 : vector<16x128xf32>
    %c0_17 = arith.constant 0 : index
    %c0_18 = arith.constant 0 : index
    %23 = vector.load %arg8[%c0_17, %c0_18] : memref<16x128xf32, #tpu.memory_space<vmem>>, vector<16x128xf32>
    tpu.vector_store %arg8[%c0_17, %c0_18], %22 {strides = array<i32>} : memref<16x128xf32, #tpu.memory_space<vmem>>, vector<16x128xf32>,
    return
  }
  func.func @transform_0(%arg0: i32) -> (i32, i32) {
    %c0_i32 = arith.constant 0 : i32
    %c0_i32_0 = arith.constant 0 : i32
    return %arg0, %c0_i32 : i32, i32
  }
  func.func @transform_1(%arg0: i32) -> (i32, i32) {
    %c0_i32 = arith.constant 0 : i32
    %c0_i32_0 = arith.constant 0 : i32
    %c0_i32_1 = arith.constant 0 : i32
    return %c0_i32, %c0_i32_0 : i32, i32
  }
  func.func @transform_2(%arg0: i32) -> (i32, i32) {
    %c0_i32 = arith.constant 0 : i32
    %c0_i32_0 = arith.constant 0 : i32
    %c0_i32_1 = arith.constant 0 : i32
    return %c0_i32, %c0_i32_0 : i32, i32
  }
  func.func @transform_3(%arg0: i32) -> (i32, i32) {
    %c0_i32 = arith.constant 0 : i32
    %c0_i32_0 = arith.constant 0 : i32
    %c0_i32_1 = arith.constant 0 : i32
    return %c0_i32, %c0_i32_0 : i32, i32
  }
  func.func @transform_4(%arg0: i32) -> (i32, i32) {
    %c0_i32 = arith.constant 0 : i32
    %c0_i32_0 = arith.constant 0 : i32
    %c0_i32_1 = arith.constant 0 : i32
    return %c0_i32, %c0_i32_0 : i32, i32
  }
  func.func @transform_5(%arg0: i32) -> (i32, i32) {
    %c0_i32 = arith.constant 0 : i32
    %c0_i32_0 = arith.constant 0 : i32
    %c0_i32_1 = arith.constant 0 : i32
    return %c0_i32, %c0_i32_0 : i32, i32
  }
  func.func @transform_6(%arg0: i32) -> (i32, i32) {
    %c0_i32 = arith.constant 0 : i32
    %c0_i32_0 = arith.constant 0 : i32
    %c0_i32_1 = arith.constant 0 : i32
    return %c0_i32, %c0_i32_0 : i32, i32
  }
  func.func @transform_7(%arg0: i32) -> (i32, i32) {
    %c0_i32 = arith.constant 0 : i32
    %c0_i32_0 = arith.constant 0 : i32
    return %arg0, %c0_i32 : i32, i32
  }
}

</mosaic_0001>

<bundles_post_ra>
// kernel: actor_forward.1
= control target key start
LH: loop header
LB: loop body
LE: loop exit
PB: predicated region body
PF: predicated region fallthrough
CT: control target
= control target key end

     0   :  { %12 = vsyncpa [#allocation3], 0  ;;  %s893_s0 = inlined_call_operand.vmem [shape: f32[16,32], index: 0, kind: input, shape index: {}]   ;;  %s894_s1 = inlined_call_operand.hbm [shape: bf16[32,256], index: 1, kind: input, shape index: {}]   ;;  %s895_s2 = inlined_call_operand.vmem [shape: f32[1,256], index: 2, kind: input, shape index: {}]   ;;  %s896_s3 = inlined_call_operand.hbm [shape: bf16[256,256], index: 3, kind: input, shape index: {}]   ;;  %s897_s4 = inlined_call_operand.vmem [shape: f32[1,256], index: 4, kind: input, shape index: {}]   ;;  %s898_s5 = inlined_call_operand.hbm [shape: bf16[256,128], index: 5, kind: input, shape index: {}]   ;;  %s899_s6 = inlined_call_operand.vmem [shape: f32[1,128], index: 6, kind: input, shape index: {}]   ;;  %s900_s7 = inlined_call_operand.vmem [shape: f32[16,128], index: 7, kind: output, shape index: {}]  }
   0x1   :  { %13 = vsyncpa [#allocation5], 0  ;;  %s815_s24 = smov [#allocation4]   ;;  %s816_s26 = smov [#allocation2]  }
   0x2   :  { %s35_s25 = sshll.u32 %s815_s24, 4  ;;  %s21_s27 = sshll.u32 %s816_s26, 4  ;;  %s36_s25 = int_to_ptr.vmem [resolvable:$true] %s35_s25  ;;  %s22_s27 = int_to_ptr.vmem [resolvable:$true] %s21_s27 }
   0x3   :  { %s759_s28 = scalar_lea.vmem %s36_s25, 4096  ;;  %p764_p1 = scmp.lt.s32.totalorder %s36_s25, %s36_s25 }
   0x4   :  { %p760_p0 = scmp.ne.s32.totalorder %s36_s25, %s759_s28  ;;  %p765_p2 = scmp.lt.s32.totalorder %s759_s28, %s759_s28 }
   0x6   :  { %p766_p3 = por %p765_p2, %p764_p1 }
   0x8   :  { %p767_p4 = pnand %p766_p3, %p760_p0 }
   0xa   :  { %770 = shalt.err (!%p767_p4)
}
   0xb   :  { %s817_s29 = smov 128   ;;  %s818_s30 = smov 8  }
   0xc   :  { %41 = dma.hbm_to_vmem [thread:$0]  %s896_s3, 4096, %s36_s25, [#allocation5], %s817_s29, %s817_s29, %s818_s30  }
   0xd   :  { %s779_s10 = scalar_lea.vmem %s22_s27, 512  ;;  %p784_p6 = scmp.lt.s32.totalorder %s22_s27, %s22_s27 }
   0xe   :  { %p780_p5 = scmp.ne.s32.totalorder %s22_s27, %s779_s10  ;;  %p785_p7 = scmp.lt.s32.totalorder %s779_s10, %s779_s10 }
  0x10   :  { %p786_p8 = por %p785_p7, %p784_p6 }
  0x12   :  { %p787_p9 = pnand %p786_p8, %p780_p5 }
  0x14   :  { %790 = shalt.err (!%p787_p9)
}
  0x15   :  { %27 = dma.hbm_to_vmem [thread:$0]  %s894_s1, 512, %s22_s27, [#allocation3], %s817_s29, %s817_s29, %s818_s30  }
  0x16   :  { %s819_s13 = smov [#allocation6]  }
  0x17   :  { %s49_s14 = sshll.u32 %s819_s13, 4  ;;  %s50_s14 = int_to_ptr.vmem [resolvable:$true] %s49_s14 }
  0x18   :  { %s799_s15 = scalar_lea.vmem %s50_s14, 2048  ;;  %p804_p11 = scmp.lt.s32.totalorder %s50_s14, %s50_s14 }
  0x19   :  { %p800_p10 = scmp.ne.s32.totalorder %s50_s14, %s799_s15  ;;  %p805_p12 = scmp.lt.s32.totalorder %s799_s15, %s799_s15 }
  0x1b   :  { %p806_p13 = por %p805_p12, %p804_p11 }
  0x1d   :  { %p807_p0 = pnand %p806_p13, %p800_p10 }
  0x1f   :  { %810 = shalt.err (!%p807_p0)
}
  0x20   :  { %s820_s3 = smov 64   ;;  %s821_s16 = smov 4  }
  0x21   :  { %55 = dma.hbm_to_vmem [thread:$0]  %s898_s5, 2048, %s50_s14, [#allocation5], %s820_s3, %s820_s3, %s821_s16  }
  0x22   :  { %811 = dma.done.wait [#allocation3], 512  }
  0x23   :  { %812 = vsyncadd [#allocation3], 4294966784 }
  0x24   :  { %813 = dma.done.wait [#allocation5], 6144  }
  0x25   :  { %814 = vsyncadd [#allocation5], 4294961152  ;;  %v822_v0 = vmov 0   ;;  %v681_v1 = vld [vmem:[#allocation2 + $0x14] ss:$8 sps:$4 sm:$0xff]   ;;  %v68_v5 = vld [vmem:[%s893_s0] sm:$0xff]  ;;  %v77_v50 = vlaneseq }
  0x26   :  { %143 = vmatprep.mubr.bf16.mxu0 %v822_v0  ;;  %v683_v2 = vld [vmem:[#allocation2 + $0x10] ss:$8 sps:$4 sm:$0xff]   ;;  %123 = vmatprep.subr.bf16.mxu0 %v681_v1  ;;  %v684_v3 = vld [vmem:[#allocation2 + $0x4] ss:$8 sps:$4 sm:$0xff]   ;;  %v686_v4 = vld [vmem:[#allocation2] ss:$8 sps:$4 sm:$0xff]  }
  0x27   :  { %124 = vmatpush1.bf16.msra.mxu0 %v683_v2  ;;  %v69_v6 = vld [vmem:[%s893_s0 + $0x8] sm:$0xff]  ;;  %v687_v7 = vld [vmem:[#allocation4 + $0x74] ss:$8 sps:$4 sm:$0xff]   ;;  %v689_v8 = vld [vmem:[#allocation4 + $0x70] ss:$8 sps:$4 sm:$0xff]   ;;  %vm107_vm0 = vcmask 261120  }
  0x28   :  { %125 = vmatprep.subr.bf16.mxu0 %v684_v3  ;;  %v690_v9 = vld [vmem:[#allocation4 + $0x64] ss:$8 sps:$4 sm:$0xff]   ;;  %v70_v10 = vpack.c.bf16 %v69_v6, %v68_v5  ;;  %364 = vmatprep.subr.bf16.mxu1 %v687_v7  ;;  %v692_v11 = vld [vmem:[#allocation4 + $0x60] ss:$8 sps:$4 sm:$0xff]   ;;  %v693_v12 = vld [vmem:[#allocation4 + $0x54] ss:$8 sps:$4 sm:$0xff]  }
  0x29   :  { %365 = vmatpush1.bf16.msra.mxu1 %v689_v8  ;;  %v695_v13 = vld [vmem:[#allocation4 + $0x50] ss:$8 sps:$4 sm:$0xff]   ;;  %v696_v14 = vld [vmem:[#allocation4 + $0x44] ss:$8 sps:$4 sm:$0xff]   ;;  %v698_v15 = vld [vmem:[#allocation4 + $0x40] ss:$8 sps:$4 sm:$0xff]  }
  0x2a   :  { %366 = vmatprep.subr.bf16.mxu1 %v690_v9  ;;  %v699_v16 = vld [vmem:[#allocation4 + $0x34] ss:$8 sps:$4 sm:$0xff]   ;;  %v701_v17 = vld [vmem:[#allocation4 + $0x30] ss:$8 sps:$4 sm:$0xff]   ;;  %v702_v18 = vld [vmem:[#allocation4 + $0x24] ss:$8 sps:$4 sm:$0xff]  }
  0x2b   :  { %126 = vmatpush1.bf16.msra.mxu0 %v686_v4  ;;  %v704_v19 = vld [vmem:[#allocation4 + $0x20] ss:$8 sps:$4 sm:$0xff]   ;;  %v705_v20 = vld [vmem:[#allocation4 + $0x14] ss:$8 sps:$4 sm:$0xff]   ;;  %v707_v21 = vld [vmem:[#allocation4 + $0x10] ss:$8 sps:$4 sm:$0xff]  }
  0x2c   :  { %v708_v22 = vld [vmem:[#allocation4 + $0x4] ss:$8 sps:$4 sm:$0xff]   ;;  %v710_v23 = vld [vmem:[#allocation4] ss:$8 sps:$4 sm:$0xff]   ;;  %v711_v24 = vld [vmem:[#allocation4 + $0xf4] ss:$8 sps:$4 sm:$0xff]  }
  0x2d   :  { %367 = vmatpush1.bf16.msra.mxu1 %v692_v11  ;;  %v713_v25 = vld [vmem:[#allocation4 + $0xf0] ss:$8 sps:$4 sm:$0xff]   ;;  %v714_v26 = vld [vmem:[#allocation4 + $0xe4] ss:$8 sps:$4 sm:$0xff]   ;;  %v716_v27 = vld [vmem:[#allocation4 + $0xe0] ss:$8 sps:$4 sm:$0xff]  }
  0x2e   :  { %601 = vmatmul.mubr.msk.bf16.vlgmr.msra.gmra.mxu0 %vm107_vm0, %v70_v10  ;;  %368 = vmatprep.subr.bf16.mxu1 %v693_v12  ;;  %v717_v28 = vld [vmem:[#allocation4 + $0xd4] ss:$8 sps:$4 sm:$0xff]   ;;  %v719_v29 = vld [vmem:[#allocation4 + $0xd0] ss:$8 sps:$4 sm:$0xff]   ;;  %v720_v30 = vld [vmem:[#allocation4 + $0xc4] ss:$8 sps:$4 sm:$0xff]  }
  0x2f   :  { %v722_v31 = vld [vmem:[#allocation4 + $0xc0] ss:$8 sps:$4 sm:$0xff]   ;;  %v723_v32 = vld [vmem:[#allocation4 + $0xb4] ss:$8 sps:$4 sm:$0xff]   ;;  %v725_v33 = vld [vmem:[#allocation4 + $0xb0] ss:$8 sps:$4 sm:$0xff]  }
  0x30   :  { %v726_v34 = vld [vmem:[#allocation4 + $0xa4] ss:$8 sps:$4 sm:$0xff]   ;;  %v728_v35 = vld [vmem:[#allocation4 + $0xa0] ss:$8 sps:$4 sm:$0xff]   ;;  %v729_v36 = vld [vmem:[#allocation4 + $0x94] ss:$8 sps:$4 sm:$0xff]  }
  0x31   :  { %369 = vmatpush1.bf16.msra.mxu1 %v695_v13  ;;  %v731_v37 = vld [vmem:[#allocation4 + $0x90] ss:$8 sps:$4 sm:$0xff]   ;;  %v732_v38 = vld [vmem:[#allocation4 + $0x84] ss:$8 sps:$4 sm:$0xff]   ;;  %v734_v39 = vld [vmem:[#allocation4 + $0x80] ss:$8 sps:$4 sm:$0xff]  }
  0x32   :  { %370 = vmatprep.subr.bf16.mxu1 %v696_v14  ;;  %v735_v40 = vld [vmem:[#allocation6 + $0x78] sm:$0xff]   ;;  %v737_v42 = vld [vmem:[#allocation6 + $0x70] sm:$0xff]   ;;  %v739_v44 = vld [vmem:[#allocation6 + $0x68] sm:$0xff]   ;;  %v78_v51 = vshrl.u32 %v77_v50, 7 }
  0x33   :  { %v736_v41 = vld [vmem:[#allocation6 + $0x38] sm:$0xff]   ;;  %651 = vmatprep.subr.bf16.mxu0 %v735_v40  ;;  %v738_v43 = vld [vmem:[#allocation6 + $0x30] sm:$0xff]   ;;  %v740_v45 = vld [vmem:[#allocation6 + $0x28] sm:$0xff]  }
  0x34   :  { %652 = vmatpush3.bf16.msra.mxu0 %v736_v41  ;;  %v741_v46 = vld [vmem:[#allocation6 + $0x60] sm:$0xff]   ;;  %v743_v48 = vld [vmem:[#allocation6 + $0x58] sm:$0xff]   ;;  %v83_v52 = vsub.s32 1, %v78_v51  ;;  %v79_v53 = vsub.s32 0, %v78_v51  ;;  %v745_v7 = vld [vmem:[#allocation6 + $0x50] sm:$0xff]  }
  0x35   :  { %371 = vmatpush1.bf16.msra.mxu1 %v698_v15  ;;  %653 = vmatprep.subr.bf16.mxu0 %v737_v42  ;;  %v742_v47 = vld [vmem:[#allocation6 + $0x20] sm:$0xff]   ;;  %v744_v49 = vld [vmem:[#allocation6 + $0x18] sm:$0xff]   ;;  %v746_v8 = vld [vmem:[#allocation6 + $0x10] sm:$0xff]  }
  0x36   :  { %372 = vmatprep.subr.bf16.mxu1 %v699_v16  ;;  %v75_v54 = vld [vmem:[%s895_s2] sm:$0x3]  ;;  %v747_v9 = vld [vmem:[#allocation6 + $0x48] sm:$0xff]  }
  0x37   :  { %v84_v56 = vrot.slane %v75_v54, %v83_v52  ;;  %v80_v57 = vrot.slane %v75_v54, %v79_v53  ;;  %v748_v10 = vld [vmem:[#allocation6 + $0x8] sm:$0xff]   ;;  %v749_v11 = vld [vmem:[#allocation6 + $0x40] sm:$0xff]  }
  0x38   :  { %654 = vmatpush3.bf16.msra.mxu0 %v738_v43  ;;  %v750_v12 = vld [vmem:[#allocation6] sm:$0xff]  }
  0x39   :  { %373 = vmatpush1.bf16.msra.mxu1 %v701_v17  ;;  %655 = vmatprep.subr.bf16.mxu0 %v739_v44  ;;  %v192_v13 = vld [vmem:[%s897_s4] sm:$0x3] }
  0x3a   :  { %374 = vmatprep.subr.bf16.mxu1 %v702_v18  ;;  %v201_v15 = vrot.slane %v192_v13, %v83_v52  ;;  %v197_v16 = vrot.slane %v192_v13, %v79_v53 }
  0x3c   :  { %656 = vmatpush3.bf16.msra.mxu0 %v740_v45 }
  0x3d   :  { %375 = vmatpush1.bf16.msra.mxu1 %v704_v19  ;;  %657 = vmatprep.subr.bf16.mxu0 %v741_v46 }
  0x3e   :  { %376 = vmatprep.subr.bf16.mxu1 %v705_v20 }
  0x40   :  { %658 = vmatpush3.bf16.msra.mxu0 %v742_v47 }
  0x41   :  { %377 = vmatpush1.bf16.msra.mxu1 %v707_v21  ;;  %659 = vmatprep.subr.bf16.mxu0 %v743_v48 }
  0x42   :  { %378 = vmatprep.subr.bf16.mxu1 %v708_v22 }
  0x44   :  { %660 = vmatpush3.bf16.msra.mxu0 %v744_v49 }
  0x45   :  { %379 = vmatpush1.bf16.msra.mxu1 %v710_v23  ;;  %661 = vmatprep.subr.bf16.mxu0 %v745_v7 }
  0x46   :  { %380 = vmatprep.subr.bf16.mxu1 %v711_v24 }
  0x48   :  { %662 = vmatpush3.bf16.msra.mxu0 %v746_v8 }
  0x49   :  { %381 = vmatpush2.bf16.msra.mxu1 %v713_v25  ;;  %663 = vmatprep.subr.bf16.mxu0 %v747_v9 }
  0x4a   :  { %382 = vmatprep.subr.bf16.mxu1 %v714_v26 }
  0x4c   :  { %664 = vmatpush3.bf16.msra.mxu0 %v748_v10 }
  0x4d   :  { %383 = vmatpush2.bf16.msra.mxu1 %v716_v27  ;;  %665 = vmatprep.subr.bf16.mxu0 %v749_v11 }
  0x4e   :  { %384 = vmatprep.subr.bf16.mxu1 %v717_v28 }
  0x50   :  { %666 = vmatpush3.bf16.msra.mxu0 %v750_v12 }
  0x51   :  { %385 = vmatpush2.bf16.msra.mxu1 %v719_v29 }
  0x52   :  { %386 = vmatprep.subr.bf16.mxu1 %v720_v30 }
  0x55   :  { %387 = vmatpush2.bf16.msra.mxu1 %v722_v31  ;;  %v634_v31 = vld [vmem:[%s899_s6] ss:$0 sm:$0xff] }
  0x56   :  { %388 = vmatprep.subr.bf16.mxu1 %v723_v32 }
  0x59   :  { %389 = vmatpush2.bf16.msra.mxu1 %v725_v33 }
  0x5a   :  { %390 = vmatprep.subr.bf16.mxu1 %v726_v34 }
  0x5d   :  { %391 = vmatpush2.bf16.msra.mxu1 %v728_v35 }
  0x5e   :  { %392 = vmatprep.subr.bf16.mxu1 %v729_v36 }
  0x61   :  { %393 = vmatpush2.bf16.msra.mxu1 %v731_v37 }
  0x62   :  { %394 = vmatprep.subr.bf16.mxu1 %v732_v38 }
  0x65   :  { %395 = vmatpush2.bf16.msra.mxu1 %v734_v39 }
  0xee   :  { %v145_v55 = vpop.f32.mrf.mxu0 }
  0xef   :  { %v146_v62 = vadd.f32 %v145_v55, %v80_v57 }
  0xf0   :  { %v147_v58 = vpop.f32.mrf.mxu0 }
  0xf1   :  { %v148_v60 = vadd.f32 %v147_v58, %v84_v56  ;;  %v154_v4 = vmax.f32 %v146_v62, 0.0 }
  0xf2   :  { %v149_v59 = vpop.f32.mrf.mxu0 }
  0xf3   :  { %v150_v61 = vadd.f32 %v149_v59, %v80_v57  ;;  %v155_v2 = vmax.f32 %v148_v60, 0.0 }
  0xf4   :  { %v151_v63 = vpop.f32.mrf.mxu0 }
  0xf5   :  { %v152_v0 = vadd.f32 %v151_v63, %v84_v56  ;;  %v156_v1 = vmax.f32 %v150_v61, 0.0 }
  0xf7   :  { %v157_v3 = vmax.f32 %v152_v0, 0.0  ;;  %v158_v6 = vpack.c.bf16 %v156_v1, %v154_v4 }
  0xf9   :  { %v159_v5 = vpack.c.bf16 %v157_v3, %v155_v2 }
  0xfb   :  { %396 = vmatprep.mubr.bf16.mxu1 %v159_v5 }
  0xfc   :  { %397 = vmatmul.mubr.bf16.vlgmr.msra.gmra.mxu1 %v158_v6 }
 0x1bc   :  { %v398_v14 = vpop.f32.mrf.mxu1 }
 0x1bd   :  { %v399_v21 = vadd.f32 %v398_v14, %v197_v16 }
 0x1be   :  { %v400_v17 = vpop.f32.mrf.mxu1 }
 0x1bf   :  { %v401_v19 = vadd.f32 %v400_v17, %v201_v15  ;;  %v407_v27 = vmax.f32 %v399_v21, 0.0 }
 0x1c0   :  { %v402_v18 = vpop.f32.mrf.mxu1 }
 0x1c1   :  { %v403_v20 = vadd.f32 %v402_v18, %v197_v16  ;;  %v408_v25 = vmax.f32 %v401_v19, 0.0 }
 0x1c2   :  { %v404_v22 = vpop.f32.mrf.mxu1 }
 0x1c3   :  { %v405_v23 = vadd.f32 %v404_v22, %v201_v15  ;;  %v409_v24 = vmax.f32 %v403_v20, 0.0 }
 0x1c5   :  { %v410_v26 = vmax.f32 %v405_v23, 0.0  ;;  %v411_v29 = vpack.c.bf16 %v409_v24, %v407_v27 }
 0x1c7   :  { %v412_v28 = vpack.c.bf16 %v410_v26, %v408_v25 }
 0x1c9   :  { %580 = vmatprep.mubr.bf16.mxu0 %v412_v28 }
 0x1ca   :  { %581 = vmatmul.mubr.bf16.vlgmr.msra.gmra.mxu0 %v411_v29 }
 0x28a   :  { %v667_v30 = vpop.f32.mrf.mxu0 }
 0x28c   :  { %v668_v32 = vpop.f32.mrf.mxu0 }
 0x28d   :  { %v669_v33 = vadd.f32 %v668_v32, %v667_v30 }
 0x28e   :  { %v670_v34 = vpop.f32.mrf.mxu0 }
 0x28f   :  { %v583_v35 = vadd.f32 %v669_v33, %v634_v31 }
 0x290   :  { %v671_v36 = vpop.f32.mrf.mxu0 }
 0x291   :  { %589 = vst [vmem:[%s900_s7] sm:$0xff] %v583_v35  ;;  %v672_v37 = vadd.f32 %v671_v36, %v670_v34 }
 0x293   :  { %v586_v38 = vadd.f32 %v672_v37, %v634_v31 }
 0x295   :  { %590 = vst [vmem:[%s900_s7 + $0x8] sm:$0xff] %v586_v38 }
 0x296   :  { %595 = vsyncpa [#allocation3], 1 }
 0x297   :  { %596 = vsyncpa [#allocation5], 1 }

</bundles_post_ra>
